<compile_context>
chip_gen: v7x
topology: tpu7x:2x2x1
jax: 0.10.0
libtpu: 0.0.40
codegen_flags: <defaults>
</compile_context>

<pallas_src>
import math

import jax
import jax.numpy as jnp
from jax.experimental import pallas as pl
from jax.experimental.pallas import tpu as pltpu


# ---------------------------------------------------------------------------
# Fbank parameters (module defaults)
# ---------------------------------------------------------------------------
SAMPLE_RATE = 16000
N_FFT = 400
WIN_LENGTH = int(round(SAMPLE_RATE / 1000.0 * 25))   # 400
HOP_LENGTH = int(round(SAMPLE_RATE / 1000.0 * 10))   # 160
N_MELS = 60
F_MIN = 0.0
F_MAX = SAMPLE_RATE / 2
N_STFT = N_FFT // 2 + 1                              # 201
AMIN = 1e-10
TOP_DB = 80.0
MULTIPLIER = 10.0                                    # power_spectrogram == 2
# db_multiplier = log10(max(amin, ref_value=1.0)) == 0.0, so the
# "- multiplier * db_multiplier" term of _amplitude_to_DB is exactly zero and
# is dropped.  Precompute the dB scale as a single constant.
DB_SCALE = MULTIPLIER / math.log(10.0)               # 10 / ln(10)

# Padded, lane/MXU-friendly sizes.
K_PAD = 512          # contraction dim: 400 -> 512 (dense K tiling, 2 bf16 vregs/row)
N_HALF = 256         # re and im each live in a 256-wide lane-dense half (201 used)
N_MELS_PAD = 128     # mel output dim: 60 -> 128 (unmasked vst)
MAX_TILE_T = 256     # frame tile (MXU M dim), multiple of 256 for v6e/v7x


# ---------------------------------------------------------------------------
# Deterministic "parameters": window-folded DFT matrix, mel filter bank
# ---------------------------------------------------------------------------
def _hamming_window(n):
    # torch.hamming_window(n, periodic=True)
    k = jnp.arange(n, dtype=jnp.float32)
    return 0.54 - 0.46 * jnp.cos(2.0 * jnp.pi * k / n)


def _dft_window_matrix():
    """(K_PAD, 2*N_HALF) bf16: [window*cos | 0 | -window*sin | 0]."""
    n = jnp.arange(N_FFT, dtype=jnp.int32)
    k = jnp.arange(N_STFT, dtype=jnp.int32)
    phase = (n[:, None] * k[None, :]) % N_FFT          # exact integer phase
    ang = (2.0 * jnp.pi / N_FFT) * phase.astype(jnp.float32)
    w = _hamming_window(WIN_LENGTH)[:, None]           # window folded in
    cos_w = jnp.cos(ang) * w                           # (400, 201)
    sin_w = -jnp.sin(ang) * w                          # (400, 201)
    m = jnp.zeros((K_PAD, 2 * N_HALF), jnp.float32)
    m = m.at[:N_FFT, :N_STFT].set(cos_w)
    m = m.at[:N_FFT, N_HALF:N_HALF + N_STFT].set(sin_w)
    return m.astype(jnp.bfloat16)


def _mel_filterbank_matrix():
    """Unpadded (N_STFT, N_MELS) f32 triangular mel filter bank."""
    def to_mel(hz):
        return 2595.0 * jnp.log10(1.0 + hz / 700.0)

    def to_hz(mel):
        return 700.0 * (10.0 ** (mel / 2595.0) - 1.0)

    mel = jnp.linspace(to_mel(jnp.float32(F_MIN)), to_mel(jnp.float32(F_MAX)),
                       N_MELS + 2)
    hz = to_hz(mel)
    band = hz[1:] - hz[:-1]
    band = band[:-1]                                   # (N_MELS,)
    f_central = hz[1:-1]                               # (N_MELS,)
    all_freqs = jnp.linspace(0.0, SAMPLE_RATE // 2, N_STFT)

    slope = (all_freqs[None, :] - f_central[:, None]) / band[:, None]
    left_side = slope + 1.0
    right_side = -slope + 1.0
    fbank = jnp.maximum(0.0, jnp.minimum(left_side, right_side))
    return fbank.T.astype(jnp.float32)                 # (N_STFT, N_MELS)


def _mel_matrix_padded():
    """(N_HALF, N_MELS_PAD) bf16, zero padded on both axes."""
    fb = _mel_filterbank_matrix()
    m = jnp.zeros((N_HALF, N_MELS_PAD), jnp.float32)
    m = m.at[:N_STFT, :N_MELS].set(fb)
    return m.astype(jnp.bfloat16)


# ---------------------------------------------------------------------------
# Framing glue (plain JAX)
# ---------------------------------------------------------------------------
def _frame_params(L):
    T = 1 + L // HOP_LENGTH
    tile_t = min(MAX_TILE_T, ((T + 7) // 8) * 8)
    num_tiles = -(-T // tile_t)
    return T, tile_t, num_tiles


def _make_frames(wav, T_pad):
    """(B, T_pad, K_PAD) bf16 frames; window is NOT applied (folded into DFT)."""
    B, L = wav.shape
    pad_left = N_FFT // 2
    pad_right = max(pad_left, (T_pad - 1) * HOP_LENGTH + K_PAD - L - pad_left)
    wav_p = jnp.pad(wav, ((0, 0), (pad_left, pad_right)))   # pad_mode='constant'
    idx = (jnp.arange(T_pad)[:, None] * HOP_LENGTH
           + jnp.arange(K_PAD)[None, :])
    # Columns 400..511 hit zero rows of the DFT matrix; rows T..T_pad-1 are
    # sliced off after the kernel -> padding is inert.
    return wav_p[:, idx].astype(jnp.bfloat16)


# ---------------------------------------------------------------------------
# Pallas kernel: (TILE_T, 512) frame tile -> (TILE_T, 128) un-clamped dB
# ---------------------------------------------------------------------------
def _fbank_kernel(frames_ref, dft_ref, fb_ref, out_ref):
    x = frames_ref[...]                                     # (TILE_T, K_PAD) bf16
    # one MXU matmul produces [re | im] in a lane-dense 512-wide result
    spec = jnp.dot(x, dft_ref[...], preferred_element_type=jnp.float32)
    re = spec[:, :N_HALF]
    im = spec[:, N_HALF:]
    power = re * re + im * im                               # f32, (TILE_T, 256)
    fb = jnp.dot(power.astype(jnp.bfloat16), fb_ref[...],
                 preferred_element_type=jnp.float32)        # (TILE_T, 128)
    out_ref[...] = DB_SCALE * jnp.log(jnp.maximum(fb, AMIN))


@jax.jit
def fbank(wav):
    """wav: (B, L) float32 -> (B, 1 + L // HOP_LENGTH, N_MELS) float32."""
    wav = wav.astype(jnp.float32)
    B, L = wav.shape
    T, tile_t, num_tiles = _frame_params(L)
    T_pad = tile_t * num_tiles

    frames = _make_frames(wav, T_pad)                       # (B, T_pad, 512) bf16
    dft_mat = _dft_window_matrix()                          # (512, 512) bf16
    fb_mat = _mel_matrix_padded()                           # (256, 128) bf16

    grid_spec = pltpu.PrefetchScalarGridSpec(
        num_scalar_prefetch=0,
        grid=(B, num_tiles),
        in_specs=[
            pl.BlockSpec((None, tile_t, K_PAD), lambda b, t: (b, t, 0)),
            pl.BlockSpec((K_PAD, 2 * N_HALF), lambda b, t: (0, 0)),
            pl.BlockSpec((N_HALF, N_MELS_PAD), lambda b, t: (0, 0)),
        ],
        out_specs=pl.BlockSpec((None, tile_t, N_MELS_PAD), lambda b, t: (b, t, 0)),
    )

    x_db = pl.pallas_call(
        _fbank_kernel,
        out_shape=jax.ShapeDtypeStruct((B, T_pad, N_MELS_PAD), jnp.float32),
        grid_spec=grid_spec,
        compiler_params=pltpu.CompilerParams(
            dimension_semantics=("parallel", "parallel")),
    )(frames, dft_mat, fb_mat)

    # Cheap per-utterance top_db clamp (XLA epilogue), on real frames/mels only.
    x_db = x_db[:, :T, :N_MELS]
    thresh = jnp.max(x_db, axis=(-2, -1), keepdims=True) - TOP_DB
    return jnp.maximum(x_db, thresh)


# ---------------------------------------------------------------------------
# References
# ---------------------------------------------------------------------------
def fbank_ref_matched(wav):
    """Same math as the kernel (bf16-quantized operands, f32 accumulation),
    in plain JAX — tight numerical check of the kernel implementation."""
    wav = wav.astype(jnp.float32)
    B, L = wav.shape
    T, tile_t, num_tiles = _frame_params(L)
    T_pad = tile_t * num_tiles
    frames = _make_frames(wav, T_pad).astype(jnp.float32)
    dft = _dft_window_matrix().astype(jnp.float32)
    fbm = _mel_matrix_padded().astype(jnp.float32)
    spec = jnp.matmul(frames, dft, precision=jax.lax.Precision.HIGHEST)
    re = spec[..., :N_HALF]
    im = spec[..., N_HALF:]
    power = re * re + im * im
    fb = jnp.matmul(power.astype(jnp.bfloat16).astype(jnp.float32), fbm,
                    precision=jax.lax.Precision.HIGHEST)
    x_db = DB_SCALE * jnp.log(jnp.maximum(fb, AMIN))
    x_db = x_db[:, :T, :N_MELS]
    thresh = jnp.max(x_db, axis=(-2, -1), keepdims=True) - TOP_DB
    return jnp.maximum(x_db, thresh)


def fbank_ref_f32(wav):
    """Full-precision (f32, rfft) reference mirroring the PyTorch module."""
    wav = wav.astype(jnp.float32)
    B, L = wav.shape
    pad = N_FFT // 2
    wav_p = jnp.pad(wav, ((0, 0), (pad, pad)))
    T = 1 + L // HOP_LENGTH
    idx = jnp.arange(T)[:, None] * HOP_LENGTH + jnp.arange(N_FFT)[None, :]
    frames = wav_p[:, idx] * _hamming_window(WIN_LENGTH)[None, None, :]
    spec = jnp.fft.rfft(frames, n=N_FFT, axis=-1)
    power = jnp.real(spec) ** 2 + jnp.imag(spec) ** 2
    fb = power @ _mel_filterbank_matrix()
    x_db = MULTIPLIER * jnp.log10(jnp.maximum(fb, AMIN))
    thresh = jnp.max(x_db, axis=(-2, -1), keepdims=True) - TOP_DB
    return jnp.maximum(x_db, thresh)


if __name__ == "__main__":
    key = jax.random.PRNGKey(0)
    B, L = 2, 1600                                     # 0.1 s of 16 kHz audio
    wav = jax.random.normal(key, (B, L), dtype=jnp.float32)

    out = jax.block_until_ready(fbank(wav))
    T = 1 + L // HOP_LENGTH

    assert out.shape == (B, T, N_MELS), out.shape
    assert bool(jnp.all(jnp.isfinite(out)))

    # Tight check against the precision-matched reference (same bf16 operands).
    ref_m = fbank_ref_matched(wav)
    assert bool(jnp.allclose(out, ref_m, rtol=1e-3, atol=1.5e-1)), \
        float(jnp.max(jnp.abs(out - ref_m)))

    # Sanity check against the full-f32 rfft reference (bf16 quantization of
    # the matmul operands bounds the achievable agreement; compare mean |dB|).
    ref_f = fbank_ref_f32(wav)
    assert float(jnp.mean(jnp.abs(out - ref_f))) < 0.3

    print("KERNEL_OK")
</pallas_src>

<mosaic_0001>
module attributes {stable_mosaic.version = 11 : i64} {
  func.func @_fbank_kernel(%arg0: i32, %arg1: i32, %arg2: memref<1x16x512xbf16, #tpu.memory_space<vmem>>, %arg3: memref<512x512xbf16, #tpu.memory_space<vmem>>, %arg4: memref<256x128xbf16, #tpu.memory_space<vmem>>, %arg5: memref<1x16x128xf32, #tpu.memory_space<vmem>>) attributes {dimension_semantics = [#tpu.dimension_semantics<parallel>, #tpu.dimension_semantics<parallel>], iteration_bounds = array<i64: 2, 1>, scalar_prefetch = 0 : i64, scratch_operands = 0 : i64, tpu.core_type = #tpu.core_type<tc>, window_params = [{transform_indices = @transform_0, window_bounds = array<i64: 1, 16, 512>}, {pipeline_mode = #tpu.pipeline_mode<synchronous>, transform_indices = @transform_1, window_bounds = array<i64: 512, 512>}, {pipeline_mode = #tpu.pipeline_mode<synchronous>, transform_indices = @transform_2, window_bounds = array<i64: 256, 128>}, {transform_indices = @transform_3, window_bounds = array<i64: 1, 16, 128>}]} {
    %c0 = arith.constant 0 : index
    %c0_0 = arith.constant 0 : index
    %c0_1 = arith.constant 0 : index
    %0 = vector.load %arg2[%c0, %c0_0, %c0_1] : memref<1x16x512xbf16, #tpu.memory_space<vmem>>, vector<1x16x512xbf16>
    %1 = vector.shape_cast %0 : vector<1x16x512xbf16> to vector<16x512xbf16>
    %c0_2 = arith.constant 0 : index
    %c0_3 = arith.constant 0 : index
    %2 = vector.load %arg3[%c0_2, %c0_3] : memref<512x512xbf16, #tpu.memory_space<vmem>>, vector<512x512xbf16>
    %cst = arith.constant dense<0.000000e+00> : vector<16x512xf32>
    %3 = tpu.matmul %1, %2, %cst {dimension_numbers = #tpu.dot_dimension_numbers<[1], [0], [0], [1], [0, 0, 1, 1], [], []>} : vector<16x512xbf16>, vector<512x512xbf16>, vector<16x512xf32> -> vector<16x512xf32>
    %4 = vector.extract_strided_slice %3 {offsets = [0, 0], sizes = [16, 256], strides = [1, 1]} : vector<16x512xf32> to vector<16x256xf32>
    %5 = vector.extract_strided_slice %3 {offsets = [0, 256], sizes = [16, 256], strides = [1, 1]} : vector<16x512xf32> to vector<16x256xf32>
    %6 = arith.mulf %4, %4 : vector<16x256xf32>
    %7 = arith.mulf %5, %5 : vector<16x256xf32>
    %8 = arith.addf %6, %7 : vector<16x256xf32>
    %9 = arith.truncf %8 : vector<16x256xf32> to vector<16x256xbf16>
    %c0_4 = arith.constant 0 : index
    %c0_5 = arith.constant 0 : index
    %10 = vector.load %arg4[%c0_4, %c0_5] : memref<256x128xbf16, #tpu.memory_space<vmem>>, vector<256x128xbf16>
    %cst_6 = arith.constant dense<0.000000e+00> : vector<16x128xf32>
    %11 = tpu.matmul %9, %10, %cst_6 {dimension_numbers = #tpu.dot_dimension_numbers<[1], [0], [0], [1], [0, 0, 1, 1], [], []>} : vector<16x256xbf16>, vector<256x128xbf16>, vector<16x128xf32> -> vector<16x128xf32>
    %cst_7 = arith.constant 1.000000e-10 : f32
    %12 = vector.broadcast %cst_7 : f32 to vector<16x128xf32>
    %13 = arith.maximumf %11, %12 : vector<16x128xf32>
    %14 = math.log %13 : vector<16x128xf32>
    %cst_8 = arith.constant 4.34294462 : f32
    %15 = vector.broadcast %cst_8 : f32 to vector<16x128xf32>
    %16 = arith.mulf %15, %14 : vector<16x128xf32>
    %c0_9 = arith.constant 0 : index
    %c0_10 = arith.constant 0 : index
    %c0_11 = arith.constant 0 : index
    %17 = vector.load %arg5[%c0_9, %c0_10, %c0_11] : memref<1x16x128xf32, #tpu.memory_space<vmem>>, vector<1x16x128xf32>
    %18 = vector.shape_cast %17 : vector<1x16x128xf32> to vector<16x128xf32>
    %19 = vector.shape_cast %16 : vector<16x128xf32> to vector<1x16x128xf32>
    tpu.vector_store %arg5[%c0_9, %c0_10, %c0_11], %19 {strides = array<i32>} : memref<1x16x128xf32, #tpu.memory_space<vmem>>, vector<1x16x128xf32>,
    return
  }
  func.func @transform_0(%arg0: i32, %arg1: i32) -> (i32, i32, i32) {
    %c0_i32 = arith.constant 0 : i32
    %c0_i32_0 = arith.constant 0 : i32
    return %arg0, %arg1, %c0_i32 : i32, i32, i32
  }
  func.func @transform_1(%arg0: i32, %arg1: i32) -> (i32, i32) {
    %c0_i32 = arith.constant 0 : i32
    %c0_i32_0 = arith.constant 0 : i32
    %c0_i32_1 = arith.constant 0 : i32
    return %c0_i32, %c0_i32_0 : i32, i32
  }
  func.func @transform_2(%arg0: i32, %arg1: i32) -> (i32, i32) {
    %c0_i32 = arith.constant 0 : i32
    %c0_i32_0 = arith.constant 0 : i32
    %c0_i32_1 = arith.constant 0 : i32
    return %c0_i32, %c0_i32_0 : i32, i32
  }
  func.func @transform_3(%arg0: i32, %arg1: i32) -> (i32, i32, i32) {
    %c0_i32 = arith.constant 0 : i32
    %c0_i32_0 = arith.constant 0 : i32
    return %arg0, %arg1, %c0_i32 : i32, i32, i32
  }
}

</mosaic_0001>

<bundles_post_ra>
// kernel: fbank.1
= control target key start
LH: loop header
LB: loop body
LE: loop exit
PB: predicated region body
PF: predicated region fallthrough
CT: control target
= control target key end

     0   :  { %s1938_s12 = smov 0   ;;  %s1940_s13 = smov 0   ;;  %s2417_s0 = inlined_call_operand.vmem [shape: bf16[2,16,512], index: 0, kind: input, shape index: {}]   ;;  %s2418_s1 = inlined_call_operand.vmem [shape: bf16[512,512], index: 1, kind: input, shape index: {}]   ;;  %s2419_s2 = inlined_call_operand.vmem [shape: bf16[256,128], index: 2, kind: input, shape index: {}]   ;;  %s2420_s3 = inlined_call_operand.vmem [shape: f32[2,16,128], index: 3, kind: output, shape index: {}]  }
   0x1   :  { %s1942_s14 = smov 0  }
   0x2 LB: > { %s25_s15 = sadd.s32 1, %s1912_s13  ;;  %p1465_p0 = scmp.ge.s32.totalorder %s1916_s14, 1  ;;  %s1916_s14 = sphi %s1942_s14, %s13_s14   ;;  %s1912_s13 = sphi %s1940_s13, %s2422_s13   ;;  %s1908_s12 = sphi %s1938_s12, %s2421_s12  }
   0x3   : > { %p27_p1 = scmp.ge.s32.totalorder %s25_s15, 2  ;;  %p159_p2 = scmp.lt.s32.totalorder %s1916_s14, 3 }
   0x5   : > { %s2424_s15 = smov (%p27_p1, %s25_s15), 0  ;;  %p160_p3 = pnand %p1465_p0, %p159_p2 }
   0x6   : > { %v1676_v0 = vld [vmem:[%s2418_s1 + $0x4] ss:$16 sps:$4 sm:$0xff] (!%p160_p3)   ;;  %v1678_v1 = vld [vmem:[%s2418_s1 + $0xc] ss:$16 sps:$4 sm:$0xff] (!%p160_p3)   ;;  %v1680_v2 = vld [vmem:[%s2418_s1] ss:$16 sps:$4 sm:$0xff] (!%p160_p3)  }
   0x7   : > { %163 = sbr.rel (%p160_p3) target bundleno = 592 (0x250), region = 32  ;;  %1006 = vmatprep.subr.bf16.mxu0 (!%p160_p3), %v1676_v0  ;;  %v1681_v3 = vld [vmem:[%s2418_s1 + $0x8] ss:$16 sps:$4 sm:$0xff] (!%p160_p3)   ;;  %1092 = vmatprep.subr.bf16.mxu1 (!%p160_p3), %v1678_v1  ;;  %v1682_v4 = vld [vmem:[%s2418_s1 + $0x24] ss:$16 sps:$4 sm:$0xff] (!%p160_p3)   ;;  %p193_p4 = scmp.lt.s32.totalorder (!%p160_p3), %s1908_s12, 1 }
   0x8   : > { %1007 = vmatpush1.bf16.msra.mxu0 (!%p160_p3), %v1680_v2  ;;  %1093 = vmatpush1.bf16.msra.mxu1 (!%p160_p3), %v1681_v3  ;;  %v1684_v5 = vld [vmem:[%s2418_s1 + $0x2c] ss:$16 sps:$4 sm:$0xff] (!%p160_p3)   ;;  %v1686_v6 = vld [vmem:[%s2418_s1 + $0x20] ss:$16 sps:$4 sm:$0xff] (!%p160_p3)   ;;  %v1687_v7 = vld [vmem:[%s2418_s1 + $0x28] ss:$16 sps:$4 sm:$0xff] (!%p160_p3)  }
   0x9   : > { %1008 = vmatprep.subr.bf16.mxu0 (!%p160_p3), %v1682_v4  ;;  %1094 = vmatprep.subr.bf16.mxu1 (!%p160_p3), %v1684_v5  ;;  %v1688_v8 = vld [vmem:[%s2418_s1 + $0x44] ss:$16 sps:$4 sm:$0xff] (!%p160_p3)   ;;  %v1690_v9 = vld [vmem:[%s2418_s1 + $0x4c] ss:$16 sps:$4 sm:$0xff] (!%p160_p3)   ;;  %v1692_v10 = vld [vmem:[%s2418_s1 + $0x40] ss:$16 sps:$4 sm:$0xff] (!%p160_p3)  }
   0xa   : > { %v1693_v11 = vld [vmem:[%s2418_s1 + $0x48] ss:$16 sps:$4 sm:$0xff] (!%p160_p3)   ;;  %v1694_v12 = vld [vmem:[%s2418_s1 + $0x64] ss:$16 sps:$4 sm:$0xff] (!%p160_p3)   ;;  %v1696_v13 = vld [vmem:[%s2418_s1 + $0x6c] ss:$16 sps:$4 sm:$0xff] (!%p160_p3)  }
   0xb   : > { %v1698_v14 = vld [vmem:[%s2418_s1 + $0x60] ss:$16 sps:$4 sm:$0xff] (!%p160_p3)   ;;  %v1699_v15 = vld [vmem:[%s2418_s1 + $0x68] ss:$16 sps:$4 sm:$0xff] (!%p160_p3)   ;;  %v1700_v16 = vld [vmem:[%s2418_s1 + $0x84] ss:$16 sps:$4 sm:$0xff] (!%p160_p3)  }
   0xc   : > { %1009 = vmatpush1.bf16.msra.mxu0 (!%p160_p3), %v1686_v6  ;;  %1095 = vmatpush1.bf16.msra.mxu1 (!%p160_p3), %v1687_v7  ;;  %v1702_v17 = vld [vmem:[%s2418_s1 + $0x8c] ss:$16 sps:$4 sm:$0xff] (!%p160_p3)   ;;  %v1704_v18 = vld [vmem:[%s2418_s1 + $0x80] ss:$16 sps:$4 sm:$0xff] (!%p160_p3)   ;;  %v1705_v19 = vld [vmem:[%s2418_s1 + $0x88] ss:$16 sps:$4 sm:$0xff] (!%p160_p3)  }
   0xd   : > { %1010 = vmatprep.subr.bf16.mxu0 (!%p160_p3), %v1688_v8  ;;  %1096 = vmatprep.subr.bf16.mxu1 (!%p160_p3), %v1690_v9  ;;  %v1706_v20 = vld [vmem:[%s2418_s1 + $0xa4] ss:$16 sps:$4 sm:$0xff] (!%p160_p3)   ;;  %v1708_v21 = vld [vmem:[%s2418_s1 + $0xac] ss:$16 sps:$4 sm:$0xff] (!%p160_p3)   ;;  %v1710_v22 = vld [vmem:[%s2418_s1 + $0xa0] ss:$16 sps:$4 sm:$0xff] (!%p160_p3)  }
   0xe   : > { %v1711_v23 = vld [vmem:[%s2418_s1 + $0xa8] ss:$16 sps:$4 sm:$0xff]   ;;  %v1712_v24 = vld [vmem:[%s2418_s1 + $0xc4] ss:$16 sps:$4 sm:$0xff]   ;;  %v1714_v25 = vld [vmem:[%s2418_s1 + $0xcc] ss:$16 sps:$4 sm:$0xff]  }
   0xf   : > { %v1716_v26 = vld [vmem:[%s2418_s1 + $0xc0] ss:$16 sps:$4 sm:$0xff]   ;;  %v1717_v27 = vld [vmem:[%s2418_s1 + $0xc8] ss:$16 sps:$4 sm:$0xff]   ;;  %v1718_v28 = vld [vmem:[%s2418_s1 + $0xe4] ss:$16 sps:$4 sm:$0xff]  }
  0x10   : > { %1011 = vmatpush1.bf16.msra.mxu0 %v1692_v10  ;;  %1097 = vmatpush1.bf16.msra.mxu1 %v1693_v11  ;;  %v1720_v29 = vld [vmem:[%s2418_s1 + $0xec] ss:$16 sps:$4 sm:$0xff]   ;;  %v1722_v30 = vld [vmem:[%s2418_s1 + $0xe0] ss:$16 sps:$4 sm:$0xff]   ;;  %v1723_v31 = vld [vmem:[%s2418_s1 + $0xe8] ss:$16 sps:$4 sm:$0xff]  }
  0x11   : > { %1012 = vmatprep.subr.bf16.mxu0 %v1694_v12  ;;  %1098 = vmatprep.subr.bf16.mxu1 %v1696_v13  ;;  %v1724_v32 = vld [vmem:[%s2418_s1 + $0x104] ss:$16 sps:$4 sm:$0xff]   ;;  %v1726_v33 = vld [vmem:[%s2418_s1 + $0x10c] ss:$16 sps:$4 sm:$0xff]   ;;  %v1728_v34 = vld [vmem:[%s2418_s1 + $0x100] ss:$16 sps:$4 sm:$0xff]  }
  0x12   : > { %v1729_v35 = vld [vmem:[%s2418_s1 + $0x108] ss:$16 sps:$4 sm:$0xff]   ;;  %v1730_v36 = vld [vmem:[%s2418_s1 + $0x124] ss:$16 sps:$4 sm:$0xff]   ;;  %v1732_v37 = vld [vmem:[%s2418_s1 + $0x12c] ss:$16 sps:$4 sm:$0xff]  }
  0x13   : > { %s2426_s12 = smov (!%p193_p4, %s1908_s12), 1  ;;  %v1734_v38 = vld [vmem:[%s2418_s1 + $0x120] ss:$16 sps:$4 sm:$0xff]   ;;  %v1735_v39 = vld [vmem:[%s2418_s1 + $0x128] ss:$16 sps:$4 sm:$0xff]  }
  0x14   : > { %1013 = vmatpush1.bf16.msra.mxu0 %v1698_v14  ;;  %1099 = vmatpush1.bf16.msra.mxu1 %v1699_v15  ;;  %v1736_v40 = vld [vmem:[%s2418_s1 + $0x144] ss:$16 sps:$4 sm:$0xff]   ;;  %v1738_v41 = vld [vmem:[%s2418_s1 + $0x14c] ss:$16 sps:$4 sm:$0xff]   ;;  %s1620_s4 = sshll.u32 %s2426_s12, 5  ;;  %s1621_s11 = sshll.u32 %s2426_s12, 4 }
  0x15   : > { %1014 = vmatprep.subr.bf16.mxu0 %v1700_v16  ;;  %1100 = vmatprep.subr.bf16.mxu1 %v1702_v17  ;;  %v1740_v42 = vld [vmem:[%s2418_s1 + $0x140] ss:$16 sps:$4 sm:$0xff]   ;;  %v1741_v43 = vld [vmem:[%s2418_s1 + $0x148] ss:$16 sps:$4 sm:$0xff]   ;;  %v1742_v44 = vld [vmem:[%s2418_s1 + $0x164] ss:$16 sps:$4 sm:$0xff]   ;;  %s2101_s17 = scalar_lea.vmem %s2417_s0, %s1620_s4  ;;  %s211_s19 = scalar_lea.vmem %s2420_s3, %s1621_s11 }
  0x16   : > { %v1744_v45 = vld [vmem:[%s2418_s1 + $0x16c] ss:$16 sps:$4 sm:$0xff]   ;;  %v1746_v46 = vld [vmem:[%s2418_s1 + $0x160] ss:$16 sps:$4 sm:$0xff]   ;;  %v1747_v47 = vld [vmem:[%s2418_s1 + $0x168] ss:$16 sps:$4 sm:$0xff]  }
  0x17   : > { %v1774_v48 = vld [vmem:[%s2101_s17 + $0x4] ss:$16 sps:$4 sm:$0xff]   ;;  %v1750_v50 = vld [vmem:[%s2418_s1 + $0x18c] ss:$16 sps:$4 sm:$0xff]   ;;  %v1752_v51 = vld [vmem:[%s2418_s1 + $0x180] ss:$16 sps:$4 sm:$0xff]  }
  0x18   : > { %1015 = vmatpush1.bf16.msra.mxu0 %v1704_v18  ;;  %1101 = vmatpush1.bf16.msra.mxu1 %v1705_v19  ;;  %v1748_v49 = vld [vmem:[%s2418_s1 + $0x184] ss:$16 sps:$4 sm:$0xff]   ;;  %v1753_v52 = vld [vmem:[%s2418_s1 + $0x188] ss:$16 sps:$4 sm:$0xff]   ;;  %v1756_v54 = vld [vmem:[%s2418_s1 + $0x1ac] ss:$16 sps:$4 sm:$0xff]  }
  0x19   : > { %1016 = vmatprep.subr.bf16.mxu0 %v1706_v20  ;;  %1102 = vmatprep.subr.bf16.mxu1 %v1708_v21  ;;  %v1754_v53 = vld [vmem:[%s2418_s1 + $0x1a4] ss:$16 sps:$4 sm:$0xff]   ;;  %v1758_v55 = vld [vmem:[%s2418_s1 + $0x1a0] ss:$16 sps:$4 sm:$0xff]   ;;  %v1759_v56 = vld [vmem:[%s2418_s1 + $0x1a8] ss:$16 sps:$4 sm:$0xff]  }
  0x1a   : > { %1038 = vmatprep.mubr.bf16.mxu0 %v1774_v48  ;;  %1124 = vmatprep.mubr.bf16.mxu1 %v1774_v48  ;;  %v1760_v57 = vld [vmem:[%s2418_s1 + $0x1c4] ss:$16 sps:$4 sm:$0xff]   ;;  %v1762_v58 = vld [vmem:[%s2418_s1 + $0x1cc] ss:$16 sps:$4 sm:$0xff]   ;;  %v1764_v59 = vld [vmem:[%s2418_s1 + $0x1c0] ss:$16 sps:$4 sm:$0xff]  }
  0x1b   : > { %v1765_v60 = vld [vmem:[%s2418_s1 + $0x1c8] ss:$16 sps:$4 sm:$0xff]   ;;  %v1766_v61 = vld [vmem:[%s2418_s1 + $0x1e4] ss:$16 sps:$4 sm:$0xff]   ;;  %v1768_v62 = vld [vmem:[%s2418_s1 + $0x1ec] ss:$16 sps:$4 sm:$0xff]  }
  0x1c   : > { %1017 = vmatpush1.bf16.msra.mxu0 %v1710_v22  ;;  %1103 = vmatpush1.bf16.msra.mxu1 %v1711_v23  ;;  %v1770_v63 = vld [vmem:[%s2418_s1 + $0x1e0] ss:$16 sps:$4 sm:$0xff]   ;;  %v1771_v0 = vld [vmem:[%s2418_s1 + $0x1e8] ss:$16 sps:$4 sm:$0xff]   ;;  %v1777_v1 = vld [vmem:[%s2418_s1 + $0x204] ss:$16 sps:$4 sm:$0xff]  }
  0x1d   : > { %1018 = vmatprep.subr.bf16.mxu0 %v1712_v24  ;;  %1104 = vmatprep.subr.bf16.mxu1 %v1714_v25  ;;  %v1780_v2 = vld [vmem:[%s2418_s1 + $0x20c] ss:$16 sps:$4 sm:$0xff]   ;;  %v1772_v3 = vld [vmem:[%s2101_s17] ss:$16 sps:$4 sm:$0xff]   ;;  %v1778_v5 = vld [vmem:[%s2418_s1 + $0x208] ss:$16 sps:$4 sm:$0xff]  }
  0x1e   : > { %v1775_v4 = vld [vmem:[%s2418_s1 + $0x200] ss:$16 sps:$4 sm:$0xff]   ;;  %v1783_v6 = vld [vmem:[%s2418_s1 + $0x224] ss:$16 sps:$4 sm:$0xff]   ;;  %v1786_v7 = vld [vmem:[%s2418_s1 + $0x22c] ss:$16 sps:$4 sm:$0xff]  }
  0x1f   : > { %v1781_v8 = vld [vmem:[%s2418_s1 + $0x220] ss:$16 sps:$4 sm:$0xff]   ;;  %v1784_v9 = vld [vmem:[%s2418_s1 + $0x228] ss:$16 sps:$4 sm:$0xff]   ;;  %v1789_v10 = vld [vmem:[%s2418_s1 + $0x244] ss:$16 sps:$4 sm:$0xff]  }
  0x20   : > { %1019 = vmatpush1.bf16.msra.mxu0 %v1716_v26  ;;  %1105 = vmatpush1.bf16.msra.mxu1 %v1717_v27  ;;  %v1792_v11 = vld [vmem:[%s2418_s1 + $0x24c] ss:$16 sps:$4 sm:$0xff]   ;;  %v1787_v12 = vld [vmem:[%s2418_s1 + $0x240] ss:$16 sps:$4 sm:$0xff]   ;;  %v1790_v13 = vld [vmem:[%s2418_s1 + $0x248] ss:$16 sps:$4 sm:$0xff]  }
  0x21   : > { %1020 = vmatprep.subr.bf16.mxu0 %v1718_v28  ;;  %1106 = vmatprep.subr.bf16.mxu1 %v1720_v29  ;;  %v1795_v14 = vld [vmem:[%s2418_s1 + $0x264] ss:$16 sps:$4 sm:$0xff]   ;;  %v1798_v15 = vld [vmem:[%s2418_s1 + $0x26c] ss:$16 sps:$4 sm:$0xff]   ;;  %v1793_v16 = vld [vmem:[%s2418_s1 + $0x260] ss:$16 sps:$4 sm:$0xff]  }
  0x22   : > { %v1796_v17 = vld [vmem:[%s2418_s1 + $0x268] ss:$16 sps:$4 sm:$0xff]   ;;  %v1801_v18 = vld [vmem:[%s2418_s1 + $0x284] ss:$16 sps:$4 sm:$0xff]   ;;  %v1804_v19 = vld [vmem:[%s2418_s1 + $0x28c] ss:$16 sps:$4 sm:$0xff]  }
  0x23   : > { %v1799_v20 = vld [vmem:[%s2418_s1 + $0x280] ss:$16 sps:$4 sm:$0xff]   ;;  %v1802_v21 = vld [vmem:[%s2418_s1 + $0x288] ss:$16 sps:$4 sm:$0xff]   ;;  %v1807_v22 = vld [vmem:[%s2418_s1 + $0x2a4] ss:$16 sps:$4 sm:$0xff]  }
  0x24   : > { %1021 = vmatpush1.bf16.msra.mxu0 %v1722_v30  ;;  %1107 = vmatpush1.bf16.msra.mxu1 %v1723_v31  ;;  %v1810_v23 = vld [vmem:[%s2418_s1 + $0x2ac] ss:$16 sps:$4 sm:$0xff]   ;;  %v1805_v24 = vld [vmem:[%s2418_s1 + $0x2a0] ss:$16 sps:$4 sm:$0xff]   ;;  %v1808_v25 = vld [vmem:[%s2418_s1 + $0x2a8] ss:$16 sps:$4 sm:$0xff]  }
  0x25   : > { %1022 = vmatprep.subr.bf16.mxu0 %v1724_v32  ;;  %1108 = vmatprep.subr.bf16.mxu1 %v1726_v33  ;;  %v1813_v26 = vld [vmem:[%s2418_s1 + $0x2c4] ss:$16 sps:$4 sm:$0xff]   ;;  %v1816_v27 = vld [vmem:[%s2418_s1 + $0x2cc] ss:$16 sps:$4 sm:$0xff]   ;;  %v1811_v28 = vld [vmem:[%s2418_s1 + $0x2c0] ss:$16 sps:$4 sm:$0xff]  }
  0x26   : > { %v1814_v29 = vld [vmem:[%s2418_s1 + $0x2c8] ss:$16 sps:$4 sm:$0xff]   ;;  %v1873_v30 = vld [vmem:[%s2101_s17 + $0xc] ss:$16 sps:$4 sm:$0xff]   ;;  %v1819_v31 = vld [vmem:[%s2418_s1 + $0x2e4] ss:$16 sps:$4 sm:$0xff]  }
  0x27   : > { %v1822_v32 = vld [vmem:[%s2418_s1 + $0x2ec] ss:$16 sps:$4 sm:$0xff]   ;;  %v1817_v33 = vld [vmem:[%s2418_s1 + $0x2e0] ss:$16 sps:$4 sm:$0xff]  }
  0x28   : > { %1023 = vmatpush1.bf16.msra.mxu0 %v1728_v34  ;;  %1109 = vmatpush1.bf16.msra.mxu1 %v1729_v35  ;;  %v1820_v34 = vld [vmem:[%s2418_s1 + $0x2e8] ss:$16 sps:$4 sm:$0xff]   ;;  %v1825_v35 = vld [vmem:[%s2418_s1 + $0x304] ss:$16 sps:$4 sm:$0xff]   ;;  %v1846_v48 = vld [vmem:[%s2418_s1 + $0x36c] ss:$16 sps:$4 sm:$0xff]  }
  0x29   : > { %1024 = vmatprep.subr.bf16.mxu0 %v1730_v36  ;;  %1110 = vmatprep.subr.bf16.mxu1 %v1732_v37  ;;  %v1828_v36 = vld [vmem:[%s2418_s1 + $0x30c] ss:$16 sps:$4 sm:$0xff]   ;;  %v1823_v37 = vld [vmem:[%s2418_s1 + $0x300] ss:$16 sps:$4 sm:$0xff]  }
  0x2c   : > { %1025 = vmatpush1.bf16.msra.mxu0 %v1734_v38  ;;  %1111 = vmatpush1.bf16.msra.mxu1 %v1735_v39  ;;  %v1826_v38 = vld [vmem:[%s2418_s1 + $0x308] ss:$16 sps:$4 sm:$0xff]   ;;  %v1831_v39 = vld [vmem:[%s2418_s1 + $0x324] ss:$16 sps:$4 sm:$0xff]  }
  0x2d   : > { %1026 = vmatprep.subr.bf16.mxu0 %v1736_v40  ;;  %1112 = vmatprep.subr.bf16.mxu1 %v1738_v41  ;;  %v1834_v40 = vld [vmem:[%s2418_s1 + $0x32c] ss:$16 sps:$4 sm:$0xff]   ;;  %v1829_v41 = vld [vmem:[%s2418_s1 + $0x320] ss:$16 sps:$4 sm:$0xff]  }
  0x30   : > { %1027 = vmatpush1.bf16.msra.mxu0 %v1740_v42  ;;  %1113 = vmatpush1.bf16.msra.mxu1 %v1741_v43  ;;  %v1832_v42 = vld [vmem:[%s2418_s1 + $0x328] ss:$16 sps:$4 sm:$0xff]   ;;  %v1837_v43 = vld [vmem:[%s2418_s1 + $0x344] ss:$16 sps:$4 sm:$0xff]  }
  0x31   : > { %1028 = vmatprep.subr.bf16.mxu0 %v1742_v44  ;;  %1114 = vmatprep.subr.bf16.mxu1 %v1744_v45  ;;  %v1840_v44 = vld [vmem:[%s2418_s1 + $0x34c] ss:$16 sps:$4 sm:$0xff]   ;;  %v1835_v45 = vld [vmem:[%s2418_s1 + $0x340] ss:$16 sps:$4 sm:$0xff]  }
  0x34   : > { %1029 = vmatpush1.bf16.msra.mxu0 %v1746_v46  ;;  %1115 = vmatpush1.bf16.msra.mxu1 %v1747_v47  ;;  %v1838_v46 = vld [vmem:[%s2418_s1 + $0x348] ss:$16 sps:$4 sm:$0xff]   ;;  %v1843_v47 = vld [vmem:[%s2418_s1 + $0x364] ss:$16 sps:$4 sm:$0xff]  }
  0x35   : > { %1030 = vmatprep.subr.bf16.mxu0 %v1748_v49  ;;  %1116 = vmatprep.subr.bf16.mxu1 %v1750_v50  ;;  %v1841_v49 = vld [vmem:[%s2418_s1 + $0x360] ss:$16 sps:$4 sm:$0xff]   ;;  %v1844_v50 = vld [vmem:[%s2418_s1 + $0x368] ss:$16 sps:$4 sm:$0xff]  }
  0x38   : > { %1031 = vmatpush1.bf16.msra.mxu0 %v1752_v51  ;;  %1117 = vmatpush1.bf16.msra.mxu1 %v1753_v52  ;;  %v1849_v51 = vld [vmem:[%s2418_s1 + $0x384] ss:$16 sps:$4 sm:$0xff]   ;;  %v1852_v52 = vld [vmem:[%s2418_s1 + $0x38c] ss:$16 sps:$4 sm:$0xff]  }
  0x39   : > { %1032 = vmatprep.subr.bf16.mxu0 %v1754_v53  ;;  %1118 = vmatprep.subr.bf16.mxu1 %v1756_v54  ;;  %v1847_v53 = vld [vmem:[%s2418_s1 + $0x380] ss:$16 sps:$4 sm:$0xff]   ;;  %v1850_v54 = vld [vmem:[%s2418_s1 + $0x388] ss:$16 sps:$4 sm:$0xff]  }
  0x3c   : > { %1033 = vmatpush1.bf16.msra.mxu0 %v1758_v55  ;;  %1119 = vmatpush1.bf16.msra.mxu1 %v1759_v56  ;;  %v1855_v55 = vld [vmem:[%s2418_s1 + $0x3a4] ss:$16 sps:$4 sm:$0xff]   ;;  %v1858_v56 = vld [vmem:[%s2418_s1 + $0x3ac] ss:$16 sps:$4 sm:$0xff]  }
  0x3d   : > { %1034 = vmatprep.subr.bf16.mxu0 %v1760_v57  ;;  %1120 = vmatprep.subr.bf16.mxu1 %v1762_v58  ;;  %v1853_v57 = vld [vmem:[%s2418_s1 + $0x3a0] ss:$16 sps:$4 sm:$0xff]   ;;  %v1856_v58 = vld [vmem:[%s2418_s1 + $0x3a8] ss:$16 sps:$4 sm:$0xff]  }
  0x40   : > { %1035 = vmatpush1.bf16.msra.mxu0 %v1764_v59  ;;  %1121 = vmatpush1.bf16.msra.mxu1 %v1765_v60  ;;  %v1861_v59 = vld [vmem:[%s2418_s1 + $0x3c4] ss:$16 sps:$4 sm:$0xff]   ;;  %v1864_v60 = vld [vmem:[%s2418_s1 + $0x3cc] ss:$16 sps:$4 sm:$0xff]  }
  0x41   : > { %1036 = vmatprep.subr.bf16.mxu0 %v1766_v61  ;;  %1122 = vmatprep.subr.bf16.mxu1 %v1768_v62  ;;  %v1859_v61 = vld [vmem:[%s2418_s1 + $0x3c0] ss:$16 sps:$4 sm:$0xff]   ;;  %v1862_v62 = vld [vmem:[%s2418_s1 + $0x3c8] ss:$16 sps:$4 sm:$0xff]  }
  0x44   : > { %1037 = vmatpush1.bf16.msra.mxu0 %v1770_v63  ;;  %1123 = vmatpush1.bf16.msra.mxu1 %v1771_v0  ;;  %v1867_v63 = vld [vmem:[%s2418_s1 + $0x3e4] ss:$16 sps:$4 sm:$0xff]   ;;  %v1870_v0 = vld [vmem:[%s2418_s1 + $0x3ec] ss:$16 sps:$4 sm:$0xff]  }
  0x45   : > { %1049 = vmatprep.subr.bf16.mxu0 %v1777_v1  ;;  %1135 = vmatprep.subr.bf16.mxu1 %v1780_v2  ;;  %v1865_v1 = vld [vmem:[%s2418_s1 + $0x3e0] ss:$16 sps:$4 sm:$0xff]   ;;  %v1868_v2 = vld [vmem:[%s2418_s1 + $0x3e8] ss:$16 sps:$4 sm:$0xff]  }
  0x47   : > { %1039 = vmatmul.mubr.bf16.vlgmr.msra.gmra.mrb[0].mxu0 %v1772_v3  ;;  %1125 = vmatmul.mubr.bf16.vlgmr.msra.gmra.mrb[0].mxu1 %v1772_v3  ;;  %v1874_v3 = vld [vmem:[%s2419_s2 + $0x40] sm:$0xff]  }
  0x48   : > { %1050 = vmatpush1.bf16.msra.mxu0 %v1775_v4  ;;  %1136 = vmatpush1.bf16.msra.mxu1 %v1778_v5  ;;  %v1871_v4 = vld [vmem:[%s2101_s17 + $0x8] ss:$16 sps:$4 sm:$0xff]   ;;  %v1875_v5 = vld [vmem:[%s2419_s2] sm:$0xff]  }
  0x49   : > { %1051 = vmatprep.subr.bf16.mxu0 %v1783_v6  ;;  %1137 = vmatprep.subr.bf16.mxu1 %v1786_v7  ;;  %v1876_v6 = vld [vmem:[%s2419_s2 + $0x48] sm:$0xff]  }
  0x4a   : > { %1081 = vmatprep.mubr.bf16.mxu0 %v1873_v30  ;;  %1167 = vmatprep.mubr.bf16.mxu1 %v1873_v30  ;;  %v1877_v7 = vld [vmem:[%s2419_s2 + $0x8] sm:$0xff]  }
  0x4c   : > { %1052 = vmatpush1.bf16.msra.mxu0 %v1781_v8  ;;  %1138 = vmatpush1.bf16.msra.mxu1 %v1784_v9  ;;  %v1878_v8 = vld [vmem:[%s2419_s2 + $0x50] sm:$0xff]  }
  0x4d   : > { %1053 = vmatprep.subr.bf16.mxu0 %v1789_v10  ;;  %1139 = vmatprep.subr.bf16.mxu1 %v1792_v11  ;;  %v1879_v9 = vld [vmem:[%s2419_s2 + $0x10] sm:$0xff]   ;;  %v1880_v10 = vld [vmem:[%s2419_s2 + $0x58] sm:$0xff]  }
  0x4e   : > { %v1881_v11 = vld [vmem:[%s2419_s2 + $0x18] sm:$0xff]  }
  0x50   : > { %1054 = vmatpush1.bf16.msra.mxu0 %v1787_v12  ;;  %1140 = vmatpush1.bf16.msra.mxu1 %v1790_v13  ;;  %v1882_v12 = vld [vmem:[%s2419_s2 + $0x60] sm:$0xff]  }
  0x51   : > { %1055 = vmatprep.subr.bf16.mxu0 %v1795_v14  ;;  %1141 = vmatprep.subr.bf16.mxu1 %v1798_v15  ;;  %v1883_v13 = vld [vmem:[%s2419_s2 + $0x20] sm:$0xff]   ;;  %v1884_v14 = vld [vmem:[%s2419_s2 + $0x68] sm:$0xff]  }
  0x52   : > { %v1885_v15 = vld [vmem:[%s2419_s2 + $0x28] sm:$0xff]  }
  0x54   : > { %1056 = vmatpush1.bf16.msra.mxu0 %v1793_v16  ;;  %1142 = vmatpush1.bf16.msra.mxu1 %v1796_v17  ;;  %v1886_v16 = vld [vmem:[%s2419_s2 + $0x70] sm:$0xff]  }
  0x55   : > { %1057 = vmatprep.subr.bf16.mxu0 %v1801_v18  ;;  %1143 = vmatprep.subr.bf16.mxu1 %v1804_v19  ;;  %v1887_v17 = vld [vmem:[%s2419_s2 + $0x30] sm:$0xff]   ;;  %v1888_v18 = vld [vmem:[%s2419_s2 + $0x78] sm:$0xff]  }
  0x56   : > { %v1889_v19 = vld [vmem:[%s2419_s2 + $0x38] sm:$0xff]  }
  0x58   : > { %1058 = vmatpush1.bf16.msra.mxu0 %v1799_v20  ;;  %1144 = vmatpush1.bf16.msra.mxu1 %v1802_v21 }
  0x59   : > { %1059 = vmatprep.subr.bf16.mxu0 %v1807_v22  ;;  %1145 = vmatprep.subr.bf16.mxu1 %v1810_v23 }
  0x5c   : > { %1060 = vmatpush1.bf16.msra.mxu0 %v1805_v24  ;;  %1146 = vmatpush1.bf16.msra.mxu1 %v1808_v25 }
  0x5d   : > { %1061 = vmatprep.subr.bf16.mxu0 %v1813_v26  ;;  %1147 = vmatprep.subr.bf16.mxu1 %v1816_v27 }
  0x60   : > { %1062 = vmatpush1.bf16.msra.mxu0 %v1811_v28  ;;  %1148 = vmatpush1.bf16.msra.mxu1 %v1814_v29 }
  0x61   : > { %1063 = vmatprep.subr.bf16.mxu0 %v1819_v31  ;;  %1149 = vmatprep.subr.bf16.mxu1 %v1822_v32 }
  0x64   : > { %1064 = vmatpush1.bf16.msra.mxu0 %v1817_v33  ;;  %1150 = vmatpush1.bf16.msra.mxu1 %v1820_v34 }
  0x65   : > { %1065 = vmatprep.subr.bf16.mxu0 %v1825_v35  ;;  %1151 = vmatprep.subr.bf16.mxu1 %v1828_v36 }
  0x68   : > { %1066 = vmatpush1.bf16.msra.mxu0 %v1823_v37  ;;  %1152 = vmatpush1.bf16.msra.mxu1 %v1826_v38 }
  0x69   : > { %1067 = vmatprep.subr.bf16.mxu0 %v1831_v39  ;;  %1153 = vmatprep.subr.bf16.mxu1 %v1834_v40 }
  0x6c   : > { %1068 = vmatpush1.bf16.msra.mxu0 %v1829_v41  ;;  %1154 = vmatpush1.bf16.msra.mxu1 %v1832_v42 }
  0x6d   : > { %1069 = vmatprep.subr.bf16.mxu0 %v1837_v43  ;;  %1155 = vmatprep.subr.bf16.mxu1 %v1840_v44 }
  0x70   : > { %1070 = vmatpush1.bf16.msra.mxu0 %v1835_v45  ;;  %1156 = vmatpush1.bf16.msra.mxu1 %v1838_v46 }
  0x71   : > { %1071 = vmatprep.subr.bf16.mxu0 %v1843_v47  ;;  %1157 = vmatprep.subr.bf16.mxu1 %v1846_v48 }
  0x74   : > { %1072 = vmatpush1.bf16.msra.mxu0 %v1841_v49  ;;  %1158 = vmatpush1.bf16.msra.mxu1 %v1844_v50 }
  0x75   : > { %1073 = vmatprep.subr.bf16.mxu0 %v1849_v51  ;;  %1159 = vmatprep.subr.bf16.mxu1 %v1852_v52 }
  0x78   : > { %1074 = vmatpush1.bf16.msra.mxu0 %v1847_v53  ;;  %1160 = vmatpush1.bf16.msra.mxu1 %v1850_v54 }
  0x79   : > { %1075 = vmatprep.subr.bf16.mxu0 %v1855_v55  ;;  %1161 = vmatprep.subr.bf16.mxu1 %v1858_v56 }
  0x7c   : > { %1076 = vmatpush1.bf16.msra.mxu0 %v1853_v57  ;;  %1162 = vmatpush1.bf16.msra.mxu1 %v1856_v58 }
  0x7d   : > { %1077 = vmatprep.subr.bf16.mxu0 %v1861_v59  ;;  %1163 = vmatprep.subr.bf16.mxu1 %v1864_v60 }
  0x80   : > { %1078 = vmatpush1.bf16.msra.mxu0 %v1859_v61  ;;  %1164 = vmatpush1.bf16.msra.mxu1 %v1862_v62 }
  0x81   : > { %1079 = vmatprep.subr.bf16.mxu0 %v1867_v63  ;;  %1165 = vmatprep.subr.bf16.mxu1 %v1870_v0 }
  0x84   : > { %1080 = vmatpush1.bf16.msra.mxu0 %v1865_v1  ;;  %1166 = vmatpush1.bf16.msra.mxu1 %v1868_v2 }
  0x85   : > { %1622 = vmatprep.subr.bf16.mxu0 %v1874_v3 }
  0x87   : > { %1082 = vmatmul.mubr.bf16.vlgmr.msra.gmra.mrb[0].mxu0 %v1871_v4  ;;  %1168 = vmatmul.mubr.bf16.vlgmr.msra.gmra.mrb[0].mxu1 %v1871_v4 }
  0x88   : > { %1623 = vmatpush3.bf16.msra.mxu0 %v1875_v5 }
  0x89   : > { %1624 = vmatprep.subr.bf16.mxu0 %v1876_v6 }
  0x8c   : > { %1625 = vmatpush3.bf16.msra.mxu0 %v1877_v7 }
  0x8d   : > { %1626 = vmatprep.subr.bf16.mxu0 %v1878_v8 }
  0x90   : > { %1627 = vmatpush3.bf16.msra.mxu0 %v1879_v9 }
  0x91   : > { %1628 = vmatprep.subr.bf16.mxu0 %v1880_v10 }
  0x94   : > { %1629 = vmatpush3.bf16.msra.mxu0 %v1881_v11 }
  0x95   : > { %1630 = vmatprep.subr.bf16.mxu0 %v1882_v12 }
  0x98   : > { %1631 = vmatpush3.bf16.msra.mxu0 %v1883_v13 }
  0x99   : > { %1632 = vmatprep.subr.bf16.mxu0 %v1884_v14 }
  0x9c   : > { %1633 = vmatpush3.bf16.msra.mxu0 %v1885_v15 }
  0x9d   : > { %1634 = vmatprep.subr.bf16.mxu0 %v1886_v16 }
  0xa0   : > { %1635 = vmatpush3.bf16.msra.mxu0 %v1887_v17 }
  0xa1   : > { %1636 = vmatprep.subr.bf16.mxu0 %v1888_v18 }
  0xa4   : > { %1637 = vmatpush3.bf16.msra.mxu0 %v1889_v19 }
 0x15a   : > { %v1083_v20 = vpop.f32.mrb[0].mxu0  ;;  %v1169_v21 = vpop.f32.mrb[0].mxu1 }
 0x15b   : > { %v1178_v22 = vmul.f32 %v1083_v20, %v1083_v20  ;;  %v1182_v23 = vmul.f32 %v1169_v21, %v1169_v21  ;;  %v1085_v24 = vpop.f32.mrb[1].mxu0  ;;  %v1171_v25 = vpop.f32.mrb[1].mxu1 }
 0x15c   : > { %v1179_v26 = vmul.f32 %v1085_v24, %v1085_v24  ;;  %v1183_v27 = vmul.f32 %v1171_v25, %v1171_v25  ;;  %v1087_v28 = vpop.f32.mrb[2].mxu0  ;;  %v1173_v29 = vpop.f32.mrb[2].mxu1 }
 0x15d   : > { %v1186_v30 = vadd.f32 %v1182_v23, %v1178_v22  ;;  %v1180_v31 = vmul.f32 %v1087_v28, %v1087_v28  ;;  %v1184_v32 = vmul.f32 %v1173_v29, %v1173_v29  ;;  %v1089_v33 = vpop.f32.mrb[3].mxu0  ;;  %v1175_v34 = vpop.f32.mrb[3].mxu1 }
 0x15e   : > { %v1187_v35 = vadd.f32 %v1183_v27, %v1179_v26  ;;  %v1181_v36 = vmul.f32 %v1089_v33, %v1089_v33  ;;  %v1185_v37 = vmul.f32 %v1175_v34, %v1175_v34 }
 0x15f   : > { %v1188_v38 = vadd.f32 %v1184_v32, %v1180_v31 }
 0x160   : > { %v1189_v39 = vadd.f32 %v1185_v37, %v1181_v36 }
 0x161   : > { %v1190_v40 = vpack.c.bf16 %v1188_v38, %v1186_v30 }
 0x162   : > { %v1191_v41 = vpack.c.bf16 %v1189_v39, %v1187_v35 }
 0x164   : > { %1352 = vmatprep.mubr.bf16.mxu0 %v1191_v41 }
 0x165   : > { %1353 = vmatmul.mubr.bf16.vlgmr.msra.gmra.mrb[4].mxu0 %v1190_v40 }
 0x238   : > { %v1638_v42 = vpop.f32.mrb[4].mxu0 }
 0x239   : > { %v1639_v43 = vpop.f32.mrb[5].mxu0 }
 0x23a   : > { %v1640_v44 = vadd.f32 %v1639_v43, %v1638_v42  ;;  %v1641_v45 = vpop.f32.mrb[6].mxu0 }
 0x23b   : > { %v1642_v46 = vpop.f32.mrb[7].mxu0 }
 0x23c   : > { %v1361_v47 = vmax.f32 %v1640_v44, 1e-10  ;;  %v1643_v48 = vadd.f32 %v1642_v46, %v1641_v45 }
 0x23e   : > { %1890 = vlog2.f32 %v1361_v47  ;;  %v1362_v49 = vmax.f32 %v1643_v48, 1e-10 }
 0x240   : > { %1892 = vlog2.f32 %v1362_v49 }
 0x248   : > { %v1891_v50 = vpop.eup %1890 }
 0x249   : > { %v1364_v51 = vmul.f32 0.6931472, %v1891_v50 }
 0x24a   : > { %v1893_v52 = vpop.eup %1892 }
 0x24b   : > { %v1367_v53 = vmul.f32 4.3429446, %v1364_v51  ;;  %v1366_v54 = vmul.f32 0.6931472, %v1893_v52 }
 0x24d   : > { %1369 = vst [vmem:[%s211_s19] sm:$0xff] %v1367_v53  ;;  %v1368_v55 = vmul.f32 4.3429446, %v1366_v54 }
 0x24f   : > { %1370 = vst [vmem:[%s211_s19 + $0x8] sm:$0xff] %v1368_v55 }
 0x250 PF: > { %s13_s14 = sadd.s32 1, %s1916_s14   ;;  %s2421_s12 = smov %s1912_s13 }
 0x251   : > { %p10_p5 = scmp.ge.s32.totalorder %s13_s14, 4   ;;  %s2422_s13 = smov %s2424_s15 }
 0x253   :  { %12 = sbr.rel (!%p10_p5) target bundleno = 2 (0x2), region = 62 }

</bundles_post_ra>
